<compile_context>
chip_gen: v7x
topology: tpu7x:2x2x1
jax: 0.10.0
libtpu: 0.0.40
codegen_flags: <defaults>
</compile_context>

<pallas_src>
import jax
import jax.numpy as jnp
from jax.experimental import pallas as pl
from jax.experimental.pallas import tpu as pltpu

_VMEM_LIMIT_BYTES = 48 << 20      # explicit scoped-VMEM limit, safe on v5e/v6e/v7x
_SMALL_FALLBACK_BYTES = 384 << 10  # below this total HBM traffic, plain jnp wins


def _per_buffer_budget_bytes() -> int:
    """Generation-aware per-buffer DMA tile budget."""
    try:
        kind = jax.devices()[0].device_kind.lower()
    except Exception:
        kind = ""
    # v5e: keep ~2 MiB tiles (smallest scoped VMEM default, BW already slow
    # enough that step overhead is <5%).  v6e/v7x: ~4 MiB tiles halve the
    # number of pipeline steps; 3 arrays x 2 buffers x 4 MiB = 24 MiB, well
    # inside the explicit 48 MiB limit everywhere.
    if "v5 lite" in kind or "v5lite" in kind or "v5e" in kind:
        return 2 << 20
    return 4 << 20


def _rezero_kernel(alpha_ref, x_ref, res_ref, o_ref):
    # alpha_ref: (1,) f32 scalar in SMEM; x/res/o: (bm, bn) VMEM tiles.
    a = alpha_ref[0]
    y = a * x_ref[...].astype(jnp.float32) + res_ref[...].astype(jnp.float32)
    o_ref[...] = y.astype(o_ref.dtype)


def _rezero_2d(alpha: jax.Array, x2d: jax.Array, res2d: jax.Array,
               out_dtype) -> jax.Array:
    """alpha: (1,) f32, x2d/res2d: [M, N] -> [M, N] = alpha * x2d + res2d."""
    M, N = x2d.shape
    budget = _per_buffer_budget_bytes()
    itemsize = max(jnp.dtype(x2d.dtype).itemsize,
                   jnp.dtype(res2d.dtype).itemsize,
                   jnp.dtype(out_dtype).itemsize)
    row_bytes = N * itemsize

    if 8 * row_bytes <= budget:
        # Full-row blocks: contiguous per-block DMA, 1-D grid.
        bn = N
        if M * row_bytes <= budget:
            bm = M
        else:
            bm = max(8, (budget // row_bytes) // 8 * 8)  # multiple of 8 sublanes
        # v7x has 2 TensorCores: keep >= 2 grid steps when the array allows it.
        if pl.cdiv(M, bm) < 2 and M >= 16:
            bm = ((pl.cdiv(M, 2) + 7) // 8) * 8
        grid = (pl.cdiv(M, bm),)
        idx = lambda i: (i, 0)
        dims = ("parallel",)
    else:
        # A single 8-row stripe overflows the budget: also split the lane axis.
        bm = M if M <= 8 else 8
        bn = max(128, (budget // (8 * itemsize)) // 128 * 128)
        bn = min(bn, N)  # N is a multiple of 128 (wrapper guarantees it)
        grid = (pl.cdiv(M, bm), pl.cdiv(N, bn))
        idx = lambda i, j: (i, j)
        dims = ("parallel", "parallel")

    cost = pl.CostEstimate(
        flops=2 * M * N,                     # one mul + one add per element
        transcendentals=0,
        bytes_accessed=M * N * (jnp.dtype(x2d.dtype).itemsize
                                + jnp.dtype(res2d.dtype).itemsize
                                + jnp.dtype(out_dtype).itemsize),
    )

    return pl.pallas_call(
        _rezero_kernel,
        out_shape=jax.ShapeDtypeStruct((M, N), out_dtype),
        grid_spec=pltpu.PrefetchScalarGridSpec(
            num_scalar_prefetch=0,
            grid=grid,
            in_specs=[
                # alpha: whole (1,) array, resident in SMEM (scalar path).
                pl.BlockSpec(memory_space=pltpu.MemorySpace.SMEM),
                pl.BlockSpec((bm, bn), idx),
                pl.BlockSpec((bm, bn), idx),
            ],
            out_specs=pl.BlockSpec((bm, bn), idx),
        ),
        compiler_params=pltpu.CompilerParams(
            dimension_semantics=dims,
            vmem_limit_bytes=_VMEM_LIMIT_BYTES,
        ),
        cost_estimate=cost,
    )(alpha, x2d, res2d)


def _pick_lane_width(total: int) -> int:
    """Largest lane-dense width (multiple of 128) that divides `total`, else 0."""
    for w in (4096, 2048, 1024, 512, 256, 128):
        if total % w == 0:
            return w
    return 0


class ReZeroPallas:
    """ReZero residual: y = alpha * x + res, alpha a learned scalar (init = scale)."""

    def __init__(self, scale: float = 0.01):
        # Mirrors nn.Parameter(torch.ones(1) * scale).
        self.alpha = jnp.full((1,), scale, dtype=jnp.float32)

    def __call__(self, x: jax.Array, res: jax.Array) -> jax.Array:
        assert x.shape == res.shape, "x and res must have the same shape"
        # Match torch promotion: alpha is an f32 tensor, so the result is
        # promoted to (at least) float32 even when x/res are bf16/f16.
        out_dtype = jnp.promote_types(jnp.promote_types(x.dtype, res.dtype),
                                      self.alpha.dtype)
        orig_shape = x.shape
        total = int(x.size)

        traffic = total * (jnp.dtype(x.dtype).itemsize
                           + jnp.dtype(res.dtype).itemsize
                           + jnp.dtype(out_dtype).itemsize)

        # Lane-density guard: present the kernel with a 2-D slab whose last dim
        # is a multiple of 128 (unmasked vst, wide contiguous DMAs).
        n_last = orig_shape[-1] if x.ndim >= 1 else 1
        if n_last >= 128 and n_last % 128 == 0:
            lane_w = n_last
        else:
            lane_w = _pick_lane_width(total)

        if total == 0 or traffic < _SMALL_FALLBACK_BYTES or lane_w == 0:
            # Tiny or ragged (no lane-dense repack) shapes: pallas_call fixed
            # cost dominates; XLA's fused multiply-add is strictly better.
            y = self.alpha[0] * x.astype(out_dtype) + res.astype(out_dtype)
            return y.astype(out_dtype)

        x2d = x.reshape((-1, lane_w))
        res2d = res.reshape((-1, lane_w))
        y2d = _rezero_2d(self.alpha, x2d, res2d, out_dtype)
        return y2d.reshape(orig_shape)


if __name__ == "__main__":
    key = jax.random.PRNGKey(0)
    k1, k2, k3, k4, k5, k6 = jax.random.split(key, 6)

    mod = ReZeroPallas(scale=0.01)

    # 1) Small spec-like shape (batch=2, seq=8, hidden=256): small-input path.
    x_s = jax.random.normal(k1, (2, 8, 256), dtype=jnp.float32)
    r_s = jax.random.normal(k2, (2, 8, 256), dtype=jnp.float32)
    out_s = jax.block_until_ready(mod(x_s, r_s))
    ref_s = mod.alpha[0] * x_s + r_s
    assert out_s.shape == ref_s.shape and out_s.dtype == jnp.float32
    assert jnp.allclose(out_s, ref_s, atol=1e-6, rtol=1e-6)

    # 2) Lane-dense f32 slab large enough to take the Pallas path.
    x_m = jax.random.normal(k3, (128, 1024), dtype=jnp.float32)
    r_m = jax.random.normal(k4, (128, 1024), dtype=jnp.float32)
    out_m = jax.block_until_ready(mod(x_m, r_m))
    ref_m = mod.alpha[0] * x_m + r_m
    assert out_m.shape == ref_m.shape and out_m.dtype == jnp.float32
    assert jnp.allclose(out_m, ref_m, atol=1e-6, rtol=1e-6)

    # 3) Mixed bf16/f32 inputs (Pallas path): torch-style promotion -> f32 out.
    x_b = jax.random.normal(k5, (128, 1024), dtype=jnp.bfloat16)
    r_b = jax.random.normal(k6, (128, 1024), dtype=jnp.float32)
    out_b = jax.block_until_ready(mod(x_b, r_b))
    ref_b = mod.alpha[0] * x_b.astype(jnp.float32) + r_b
    assert out_b.dtype == jnp.float32
    assert jnp.allclose(out_b, ref_b, atol=1e-6, rtol=1e-6)

    print("KERNEL_OK")
</pallas_src>

<mosaic_0001>
module attributes {stable_mosaic.version = 11 : i64} {
  func.func @_rezero_kernel(%arg0: i32, %arg1: memref<1xf32, #tpu.memory_space<smem>>, %arg2: memref<64x1024xf32, #tpu.memory_space<vmem>>, %arg3: memref<64x1024xf32, #tpu.memory_space<vmem>>, %arg4: memref<64x1024xf32, #tpu.memory_space<vmem>>) attributes {dimension_semantics = [#tpu.dimension_semantics<parallel>], iteration_bounds = array<i64: 2>, scalar_prefetch = 0 : i64, scratch_operands = 0 : i64, tpu.core_type = #tpu.core_type<tc>, window_params = [{transform_indices = @transform_0, window_bounds = array<i64: 1>}, {transform_indices = @transform_1, window_bounds = array<i64: 64, 1024>}, {transform_indices = @transform_2, window_bounds = array<i64: 64, 1024>}, {transform_indices = @transform_3, window_bounds = array<i64: 64, 1024>}]} {
    %c0 = arith.constant 0 : index
    %0 = memref.load %arg1[%c0] : memref<1xf32, #tpu.memory_space<smem>>
    %c0_0 = arith.constant 0 : index
    %c0_1 = arith.constant 0 : index
    %1 = vector.load %arg2[%c0_0, %c0_1] : memref<64x1024xf32, #tpu.memory_space<vmem>>, vector<64x1024xf32>
    %2 = vector.broadcast %0 : f32 to vector<64x1024xf32>
    %3 = arith.mulf %2, %1 : vector<64x1024xf32>
    %c0_2 = arith.constant 0 : index
    %c0_3 = arith.constant 0 : index
    %4 = vector.load %arg3[%c0_2, %c0_3] : memref<64x1024xf32, #tpu.memory_space<vmem>>, vector<64x1024xf32>
    %5 = arith.addf %3, %4 : vector<64x1024xf32>
    %c0_4 = arith.constant 0 : index
    %c0_5 = arith.constant 0 : index
    %6 = vector.load %arg4[%c0_4, %c0_5] : memref<64x1024xf32, #tpu.memory_space<vmem>>, vector<64x1024xf32>
    tpu.vector_store %arg4[%c0_4, %c0_5], %5 {strides = array<i32>} : memref<64x1024xf32, #tpu.memory_space<vmem>>, vector<64x1024xf32>,
    return
  }
  func.func @transform_0(%arg0: i32) -> i32 {
    %c0_i32 = arith.constant 0 : i32
    %c0_i32_0 = arith.constant 0 : i32
    return %c0_i32 : i32
  }
  func.func @transform_1(%arg0: i32) -> (i32, i32) {
    %c0_i32 = arith.constant 0 : i32
    %c0_i32_0 = arith.constant 0 : i32
    return %arg0, %c0_i32 : i32, i32
  }
  func.func @transform_2(%arg0: i32) -> (i32, i32) {
    %c0_i32 = arith.constant 0 : i32
    %c0_i32_0 = arith.constant 0 : i32
    return %arg0, %c0_i32 : i32, i32
  }
  func.func @transform_3(%arg0: i32) -> (i32, i32) {
    %c0_i32 = arith.constant 0 : i32
    %c0_i32_0 = arith.constant 0 : i32
    return %arg0, %c0_i32 : i32, i32
  }
}

</mosaic_0001>

<bundles_post_ra>
// kernel: tpu_custom_call.1
= control target key start
LH: loop header
LB: loop body
LE: loop exit
PB: predicated region body
PF: predicated region fallthrough
CT: control target
= control target key end

     0   :  { %s1405_s0 = inlined_call_operand.<no memory space> [shape: f32[1], index: 0, kind: input, shape index: {}]   ;;  %s1406_s1 = inlined_call_operand.hbm [shape: f32[128,1024], index: 1, kind: input, shape index: {}]   ;;  %s1407_s2 = inlined_call_operand.hbm [shape: f32[128,1024], index: 2, kind: input, shape index: {}]   ;;  %s1408_s3 = inlined_call_operand.hbm [shape: f32[128,1024], index: 3, kind: output, shape index: {}]  }
   0x1   :  { %8 = sst [smem:[#allocation2]] %s1405_s0 }
   0x2   :  { %9 = vsyncpa [#allocation4], 0 }
   0x3   :  { %11 = vsyncpa [#allocation4 + $0x1], 0 }
   0x4   :  { %12 = vsyncpa [#allocation7], 0 }
   0x5   :  { %14 = vsyncpa [#allocation7 + $0x1], 0 }
   0x6   :  { %15 = vsyncpa [#allocation5], 0 }
   0x7   :  { %17 = vsyncpa [#allocation5 + $0x1], 0  ;;  %s912_s14 = smov 0   ;;  %s914_s15 = smov 0  }
   0x8   :  { %s916_s16 = smov 0   ;;  %s918_s17 = smov 0  }
   0x9 LB: > { %s933_s0 = sadd.s32 4294967295, %s880_s17   ;;  %s668_s18 = sadd.s32 4294967294, %s880_s17   ;;  %s880_s17 = sphi %s918_s17, %s1424_s17   ;;  %s876_s16 = sphi %s916_s16, %s1423_s16   ;;  %s872_s15 = sphi %s914_s15, %s1422_s15   ;;  %s868_s14 = sphi %s912_s14, %s1421_s14  }
   0xa   : > { %s937_s19 = sadd.s32 1, %s880_s17   ;;  %s51_s20 = sadd.s32 1, %s876_s16 }
   0xb   : > { %s48_s21 = ssub.s32 %s880_s17, %s937_s19  ;;  %p58_p0 = scmp.ne.s32.totalorder %s876_s16, %s872_s15 }
   0xc   : > { %p49_p1 = scmp.eq.s32.totalorder %s48_s21, 0  ;;  %p59_p2 = scmp.eq.s32.totalorder %s880_s17, 0 }
   0xd   : > { %p64_p3 = scmp.ne.s32.totalorder %s872_s15, %s868_s14  ;;  %p65_p4 = scmp.eq.s32.totalorder %s933_s0, 0 }
   0xe   : > { %s949_s22 = scalar_select %p49_p1, %s876_s16, %s51_s20  }
   0xf   : > { %p951_p5 = por %p59_p2, %p58_p0  ;;  %p955_p6 = por %p65_p4, %p64_p3 }
  0x10   : > { %p114_p7 = scmp.eq.s32.totalorder %s933_s0, 1  ;;  %p120_p8 = scmp.eq.s32.totalorder %s668_s18, 1 }
  0x11   : > { %s1412_s24 = scalar_select %p955_p6, 1, 0 }
  0x12   : > { %p712_p10 = scmp.lt.s32.totalorder %s880_s17, 2  ;;  %p962_p11 = por %p114_p7, %p58_p0 }
  0x13   : > { %p966_p12 = por %p120_p8, %p64_p3  ;;  %s971_s27 = sand.u32 1, %s876_s16  }
  0x14   : > { %s1413_s25 = scalar_select %p962_p11, 1, 0 }
  0x15   : > { %s1414_s26 = scalar_select %p966_p12, 1, 0 }
  0x16   : > { %s690_s28 = sshll.u32 %s880_s17, 13  ;;  %s671_s29 = sshll.u32 %s971_s27, 9 }
  0x17   : > { %s980_s5 = scalar_lea.hbm %s1406_s1, %s690_s28  ;;  %s147_s6 = scalar_lea.vmem [#allocation3], %s671_s29 }
  0x18   : > { %s155_s7 = sshll.u32 %s147_s6, 4  ;;  %p986_p13 = pnand %p712_p10, %p951_p5  ;;  %s990_s7 = int_to_ptr.vmem [resolvable:$true] %s155_s7 }
  0x19   : > { %s144_s9 = scalar_lea.sflag [#allocation4], %s971_s27  ;;  %s750_s10 = scalar_lea.hbm %s980_s5, 8192 }
  0x1a   : > { %p751_p0 = scmp.ne.s32.totalorder %s980_s5, %s750_s10  ;;  %p752_p1 = pneg %p986_p13 }
  0x1b   : > { %s755_s13 = scalar_lea.hbm %s1406_s1, 16384  ;;  %p756_p4 = scmp.lt.u32.totalorder %s980_s5, %s1406_s1 }
  0x1c   : > { %p753_p2 = pnand %p752_p1, %p751_p0  ;;  %p757_p5 = scmp.lt.u32.totalorder %s755_s13, %s750_s10 }
  0x1d   : > { %p759_p8 = scmp.lt.u32.totalorder %s750_s10, %s980_s5 }
  0x1e   : > { %p754_p3 = pneg %p753_p2  ;;  %p758_p7 = por %p757_p5, %p756_p4 }
  0x20   : > { %p760_p10 = por %p759_p8, %p758_p7 }
  0x22   : > { %p761_p9 = pnand %p760_p10, %p754_p3 }
  0x24   : > { %764 = shalt.err (!%p761_p9)
}
  0x25   : > { %s765_s21 = scalar_lea.vmem %s990_s7, 8192  ;;  %s882_s23 = smov [#allocation3]  }
  0x26   : > { %p766_p0 = scmp.ne.s32.totalorder %s990_s7, %s765_s21  ;;  %s770_s30 = sshll.u32 %s882_s23, 4  ;;  %s771_s30 = int_to_ptr.vmem [resolvable:$false] %s770_s30 }
  0x27   : > { %s772_s4 = scalar_lea.vmem %s771_s30, 16384  ;;  %p773_p11 = scmp.lt.s32.totalorder %s990_s7, %s771_s30 }
  0x28   : > { %p768_p2 = pnand %p766_p0, %p752_p1  ;;  %p774_p4 = scmp.lt.s32.totalorder %s772_s4, %s765_s21 }
  0x2a   : > { %p769_p12 = pneg %p768_p2  ;;  %p775_p5 = por %p774_p4, %p773_p11 }
  0x2c   : > { %p776_p7 = pnand %p775_p5, %p769_p12 }
  0x2e   : > { %779 = shalt.err (!%p776_p7)
}
  0x2f   : > { %s883_s6 = smov 1024   ;;  %s884_s10 = smov 64  }
  0x30   : > { %704 = dma.hbm_to_vmem [thread:$0]  (!%p986_p13), %s980_s5, 8192, %s990_s7, %s144_s9, %s883_s6, %s883_s6, %s884_s10  }
  0x31   : > { %p679_p9 = scmp.ge.s32.totalorder %s880_s17, 1  ;;  %p185_p11 = scmp.lt.s32.totalorder %s880_s17, 3 }
  0x32   : > { %s1034_s18 = scalar_lea.hbm %s1407_s2, %s690_s28  ;;  %s169_s20 = scalar_lea.vmem [#allocation6], %s671_s29 }
  0x33   : > { %p1025_p12 = pnand %p679_p9, %p185_p11  ;;  %s177_s21 = sshll.u32 %s169_s20, 4  ;;  %s1038_s21 = int_to_ptr.vmem [resolvable:$true] %s177_s21 }
  0x34   : > { %s166_s5 = scalar_lea.sflag [#allocation7], %s971_s27  ;;  %s780_s7 = scalar_lea.hbm %s1034_s18, 8192 }
  0x35   : > { %p781_p3 = scmp.ne.s32.totalorder %s1034_s18, %s780_s7  ;;  %s785_s28 = scalar_lea.hbm %s1407_s2, 16384 }
  0x36   : > { %p786_p0 = scmp.lt.u32.totalorder %s1034_s18, %s1407_s2  ;;  %p787_p2 = scmp.lt.u32.totalorder %s785_s28, %s780_s7 }
  0x37   : > { %p783_p8 = pnand %p781_p3, %p752_p1  ;;  %p789_p5 = scmp.lt.u32.totalorder %s780_s7, %s1034_s18 }
  0x38   : > { %p788_p4 = por %p787_p2, %p786_p0 }
  0x39   : > { %p784_p10 = pneg %p783_p8 }
  0x3a   : > { %p790_p7 = por %p789_p5, %p788_p4 }
  0x3c   : > { %p791_p9 = pnand %p790_p7, %p784_p10 }
  0x3e   : > { %794 = shalt.err (!%p791_p9)
}
  0x3f   : > { %s795_s29 = scalar_lea.vmem %s1038_s21, 8192  ;;  %s885_s12 = smov [#allocation6]  }
  0x40   : > { %p796_p11 = scmp.ne.s32.totalorder %s1038_s21, %s795_s29  ;;  %s800_s13 = sshll.u32 %s885_s12, 4  ;;  %s801_s13 = int_to_ptr.vmem [resolvable:$false] %s800_s13 }
  0x41   : > { %s802_s20 = scalar_lea.vmem %s801_s13, 16384  ;;  %p803_p6 = scmp.lt.s32.totalorder %s1038_s21, %s801_s13 }
  0x42   : > { %p798_p3 = pnand %p796_p11, %p752_p1  ;;  %p804_p0 = scmp.lt.s32.totalorder %s802_s20, %s795_s29 }
  0x44   : > { %p799_p8 = pneg %p798_p3  ;;  %p805_p2 = por %p804_p0, %p803_p6 }
  0x46   : > { %p806_p4 = pnand %p805_p2, %p799_p8 }
  0x48   : > { %809 = shalt.err (!%p806_p4)
}
  0x49   : > { %707 = dma.hbm_to_vmem [thread:$0]  (!%p986_p13), %s1034_s18, 8192, %s1038_s21, %s166_s5, %s883_s6, %s883_s6, %s884_s10  }
  0x4a   : > { %189 = sbr.rel (%p1025_p12) target bundleno = 152 (0x98), region = 32  ;;  %s1072_s7 = sand.u32 (!%p1025_p12), 1, %s872_s15  }
  0x4b   : > { %s1075_s9 = sshll.u32 (!%p1025_p12), %s1072_s7, 9  ;;  %s192_s8 = scalar_lea.sflag (!%p1025_p12), [#allocation4], %s1072_s7 }
  0x4c   : > { %s1079_s23 = scalar_lea.vmem (!%p1025_p12), [#allocation3], %s1075_s9  ;;  %p1417_p6 = scmp.ne.s32.totalorder (!%p1025_p12), %s1412_s24, 0 }
  0x51   : > { %855 = dma.done.wait (%p1417_p6), %s192_s8, 8192  }
  0x52   : > { %857 = vsyncadd (%p1417_p6), %s192_s8, 4294959104  ;;  %s201_s27 = scalar_lea.sflag [#allocation7], %s1072_s7  ;;  %s1087_s6 = scalar_lea.vmem [#allocation6], %s1075_s9 }
  0x53   : > { %859 = dma.done.wait (%p1417_p6), %s201_s27, 8192  }
  0x54   : > { %861 = vsyncadd (%p1417_p6), %s201_s27, 4294959104  ;;  %s235_s10 = sld [smem:[#allocation2]]  ;;  %v236_v0 = vld [vmem:[%s1079_s23] sm:$0xff]  ;;  %v237_v3 = vld [vmem:[%s1079_s23 + $0x8] sm:$0xff]  ;;  %s1117_s24 = scalar_lea.vmem [#allocation8], %s1075_s9 }
  0x55   : > { %v365_v2 = vld [vmem:[%s1087_s6] sm:$0xff]  ;;  %v366_v6 = vld [vmem:[%s1087_s6 + $0x8] sm:$0xff]  ;;  %v238_v7 = vld [vmem:[%s1079_s23 + $0x10] sm:$0xff]  ;;  %s694_s11 = sshll.u32 %s933_s0, 13  ;;  %s572_s18 = sshll.u32 %s1117_s24, 4  ;;  %s1357_s18 = int_to_ptr.vmem [resolvable:$true] %s572_s18 }
  0x56   : > { %v367_v8 = vld [vmem:[%s1087_s6 + $0x10] sm:$0xff]  ;;  %v239_v10 = vld [vmem:[%s1079_s23 + $0x18] sm:$0xff]  ;;  %v240_v12 = vld [vmem:[%s1079_s23 + $0x20] sm:$0xff]  ;;  %s1355_s5 = scalar_lea.hbm %s1408_s3, %s694_s11  ;;  %s558_s28 = scalar_lea.sflag [#allocation5], %s1072_s7 }
  0x57   : > { %v368_v11 = vld [vmem:[%s1087_s6 + $0x18] sm:$0xff]  ;;  %v369_v17 = vld [vmem:[%s1087_s6 + $0x20] sm:$0xff]  ;;  %v241_v18 = vld [vmem:[%s1079_s23 + $0x28] sm:$0xff]  ;;  %s810_s30 = scalar_lea.vmem %s1357_s18, 8192  ;;  %p1418_p1 = scmp.ne.s32.totalorder %s1413_s25, 0 }
  0x58   : > { %v370_v19 = vld [vmem:[%s1087_s6 + $0x28] sm:$0xff]  ;;  %v242_v22 = vld [vmem:[%s1079_s23 + $0x30] sm:$0xff]  ;;  %v243_v24 = vld [vmem:[%s1079_s23 + $0x38] sm:$0xff]  ;;  %p811_p13 = scmp.ne.s32.totalorder %s1357_s18, %s810_s30  ;;  %s886_s4 = smov [#allocation8]  }
  0x59   : > { %v371_v23 = vld [vmem:[%s1087_s6 + $0x30] sm:$0xff]  ;;  %v372_v29 = vld [vmem:[%s1087_s6 + $0x38] sm:$0xff]  ;;  %v244_v30 = vld [vmem:[%s1079_s23 + $0x40] sm:$0xff]  ;;  %s814_s29 = sshll.u32 %s886_s4, 4  ;;  %s815_s29 = int_to_ptr.vmem [resolvable:$false] %s814_s29 }
  0x5a   : > { %v1094_v1 = vstv %s235_s10  ;;  %v373_v31 = vld [vmem:[%s1087_s6 + $0x40] sm:$0xff]  ;;  %v245_v34 = vld [vmem:[%s1079_s23 + $0x48] sm:$0xff]  ;;  %v246_v36 = vld [vmem:[%s1079_s23 + $0x50] sm:$0xff]  ;;  %p812_p12 = pnand %p811_p13, %p1418_p1  ;;  %s816_s12 = scalar_lea.vmem %s815_s29, 16384 }
  0x5b   : > { %v301_v4 = vmul.f32 %v1094_v1, %v236_v0  ;;  %v302_v5 = vmul.f32 %v1094_v1, %v237_v3  ;;  %v303_v9 = vmul.f32 %v1094_v1, %v238_v7  ;;  %v304_v15 = vmul.f32 %v1094_v1, %v239_v10  ;;  %v374_v35 = vld [vmem:[%s1087_s6 + $0x48] sm:$0xff]  ;;  %v375_v41 = vld [vmem:[%s1087_s6 + $0x50] sm:$0xff]  ;;  %v247_v42 = vld [vmem:[%s1079_s23 + $0x58] sm:$0xff]  ;;  %p817_p5 = scmp.lt.s32.totalorder %s1357_s18, %s815_s29  ;;  %p818_p7 = scmp.lt.s32.totalorder %s816_s12, %s810_s30 }
  0x5c   : > { %v305_v16 = vmul.f32 %v1094_v1, %v240_v12  ;;  %v306_v21 = vmul.f32 %v1094_v1, %v241_v18  ;;  %v307_v27 = vmul.f32 %v1094_v1, %v242_v22  ;;  %v308_v28 = vmul.f32 %v1094_v1, %v243_v24  ;;  %v376_v43 = vld [vmem:[%s1087_s6 + $0x58] sm:$0xff]  ;;  %v248_v46 = vld [vmem:[%s1079_s23 + $0x60] sm:$0xff]  ;;  %v249_v48 = vld [vmem:[%s1079_s23 + $0x68] sm:$0xff]  ;;  %p813_p10 = pneg %p812_p12 }
  0x5d   : > { %v429_v13 = vadd.f32 %v365_v2, %v301_v4  ;;  %v430_v14 = vadd.f32 %v366_v6, %v302_v5  ;;  %v431_v20 = vadd.f32 %v367_v8, %v303_v9  ;;  %v432_v25 = vadd.f32 %v368_v11, %v304_v15  ;;  %v377_v47 = vld [vmem:[%s1087_s6 + $0x60] sm:$0xff]  ;;  %v378_v53 = vld [vmem:[%s1087_s6 + $0x68] sm:$0xff]  ;;  %v250_v54 = vld [vmem:[%s1079_s23 + $0x70] sm:$0xff]  ;;  %p819_p9 = por %p818_p7, %p817_p5 }
  0x5e   : > { %v433_v26 = vadd.f32 %v369_v17, %v305_v16  ;;  %v434_v32 = vadd.f32 %v370_v19, %v306_v21  ;;  %v309_v33 = vmul.f32 %v1094_v1, %v244_v30  ;;  %v435_v37 = vadd.f32 %v371_v23, %v307_v27  ;;  %v379_v55 = vld [vmem:[%s1087_s6 + $0x70] sm:$0xff]  ;;  %v251_v58 = vld [vmem:[%s1079_s23 + $0x78] sm:$0xff]  ;;  %v252_v60 = vld [vmem:[%s1079_s23 + $0x80] sm:$0xff] }
  0x5f   : > { %493 = vst [vmem:[%s1117_s24] sm:$0xff] %v429_v13  ;;  %494 = vst [vmem:[%s1117_s24 + $0x8] sm:$0xff] %v430_v14  ;;  %v436_v38 = vadd.f32 %v372_v29, %v308_v28  ;;  %v310_v39 = vmul.f32 %v1094_v1, %v245_v34  ;;  %v311_v40 = vmul.f32 %v1094_v1, %v246_v36  ;;  %v380_v59 = vld [vmem:[%s1087_s6 + $0x78] sm:$0xff]  ;;  %v381_v2 = vld [vmem:[%s1087_s6 + $0x80] sm:$0xff]  ;;  %p820_p11 = pnand %p819_p9, %p813_p10 }
  0x60   : > { %495 = vst [vmem:[%s1117_s24 + $0x10] sm:$0xff] %v431_v20  ;;  %496 = vst [vmem:[%s1117_s24 + $0x18] sm:$0xff] %v432_v25  ;;  %v437_v44 = vadd.f32 %v373_v31, %v309_v33  ;;  %v312_v45 = vmul.f32 %v1094_v1, %v247_v42  ;;  %v313_v51 = vmul.f32 %v1094_v1, %v248_v46  ;;  %v253_v3 = vld [vmem:[%s1079_s23 + $0x88] sm:$0xff]  ;;  %v254_v7 = vld [vmem:[%s1079_s23 + $0x90] sm:$0xff] }
  0x61   : > { %497 = vst [vmem:[%s1117_s24 + $0x20] sm:$0xff] %v433_v26  ;;  %498 = vst [vmem:[%s1117_s24 + $0x28] sm:$0xff] %v434_v32  ;;  %v438_v49 = vadd.f32 %v374_v35, %v310_v39  ;;  %v439_v50 = vadd.f32 %v375_v41, %v311_v40  ;;  %v314_v52 = vmul.f32 %v1094_v1, %v249_v48  ;;  %v382_v4 = vld [vmem:[%s1087_s6 + $0x88] sm:$0xff]  ;;  %v383_v8 = vld [vmem:[%s1087_s6 + $0x90] sm:$0xff] }
  0x62   : > { %499 = vst [vmem:[%s1117_s24 + $0x30] sm:$0xff] %v435_v37  ;;  %500 = vst [vmem:[%s1117_s24 + $0x38] sm:$0xff] %v436_v38  ;;  %v440_v56 = vadd.f32 %v376_v43, %v312_v45  ;;  %v315_v57 = vmul.f32 %v1094_v1, %v250_v54  ;;  %v441_v61 = vadd.f32 %v377_v47, %v313_v51  ;;  %v255_v9 = vld [vmem:[%s1079_s23 + $0x98] sm:$0xff]  ;;  %v256_v15 = vld [vmem:[%s1079_s23 + $0xa0] sm:$0xff] }
  0x63   : > { %501 = vst [vmem:[%s1117_s24 + $0x40] sm:$0xff] %v437_v44  ;;  %502 = vst [vmem:[%s1117_s24 + $0x48] sm:$0xff] %v438_v49  ;;  %v442_v62 = vadd.f32 %v378_v53, %v314_v52  ;;  %v316_v63 = vmul.f32 %v1094_v1, %v251_v58  ;;  %v317_v0 = vmul.f32 %v1094_v1, %v252_v60  ;;  %v384_v14 = vld [vmem:[%s1087_s6 + $0x98] sm:$0xff]  ;;  %v385_v16 = vld [vmem:[%s1087_s6 + $0xa0] sm:$0xff] }
  0x64   : > { %503 = vst [vmem:[%s1117_s24 + $0x50] sm:$0xff] %v439_v50  ;;  %504 = vst [vmem:[%s1117_s24 + $0x58] sm:$0xff] %v440_v56  ;;  %v443_v5 = vadd.f32 %v379_v55, %v315_v57  ;;  %v318_v6 = vmul.f32 %v1094_v1, %v253_v3  ;;  %v319_v12 = vmul.f32 %v1094_v1, %v254_v7  ;;  %v257_v19 = vld [vmem:[%s1079_s23 + $0xa8] sm:$0xff]  ;;  %v258_v21 = vld [vmem:[%s1079_s23 + $0xb0] sm:$0xff] }
  0x65   : > { %505 = vst [vmem:[%s1117_s24 + $0x60] sm:$0xff] %v441_v61  ;;  %506 = vst [vmem:[%s1117_s24 + $0x68] sm:$0xff] %v442_v62  ;;  %v444_v10 = vadd.f32 %v380_v59, %v316_v63  ;;  %v445_v11 = vadd.f32 %v381_v2, %v317_v0  ;;  %v320_v13 = vmul.f32 %v1094_v1, %v255_v9  ;;  %v386_v20 = vld [vmem:[%s1087_s6 + $0xa8] sm:$0xff]  ;;  %v387_v26 = vld [vmem:[%s1087_s6 + $0xb0] sm:$0xff] }
  0x66   : > { %507 = vst [vmem:[%s1117_s24 + $0x70] sm:$0xff] %v443_v5  ;;  %v446_v17 = vadd.f32 %v382_v4, %v318_v6  ;;  %v321_v18 = vmul.f32 %v1094_v1, %v256_v15  ;;  %v447_v22 = vadd.f32 %v383_v8, %v319_v12  ;;  %v322_v24 = vmul.f32 %v1094_v1, %v257_v19  ;;  %v259_v27 = vld [vmem:[%s1079_s23 + $0xb8] sm:$0xff]  ;;  %v260_v31 = vld [vmem:[%s1079_s23 + $0xc0] sm:$0xff]  ;;  %v261_v33 = vld [vmem:[%s1079_s23 + $0xc8] sm:$0xff] }
  0x67   : > { %508 = vst [vmem:[%s1117_s24 + $0x78] sm:$0xff] %v444_v10  ;;  %509 = vst [vmem:[%s1117_s24 + $0x80] sm:$0xff] %v445_v11  ;;  %v448_v23 = vadd.f32 %v384_v14, %v320_v13  ;;  %v323_v25 = vmul.f32 %v1094_v1, %v258_v21  ;;  %v388_v28 = vld [vmem:[%s1087_s6 + $0xb8] sm:$0xff]  ;;  %v324_v30 = vmul.f32 %v1094_v1, %v259_v27  ;;  %v389_v32 = vld [vmem:[%s1087_s6 + $0xc0] sm:$0xff] }
  0x68   : > { %510 = vst [vmem:[%s1117_s24 + $0x88] sm:$0xff] %v446_v17  ;;  %v449_v29 = vadd.f32 %v385_v16, %v321_v18  ;;  %511 = vst [vmem:[%s1117_s24 + $0x90] sm:$0xff] %v447_v22  ;;  %v450_v34 = vadd.f32 %v386_v20, %v322_v24  ;;  %v325_v36 = vmul.f32 %v1094_v1, %v260_v31  ;;  %v390_v38 = vld [vmem:[%s1087_s6 + $0xc8] sm:$0xff]  ;;  %v262_v39 = vld [vmem:[%s1079_s23 + $0xd0] sm:$0xff] }
  0x69   : > { %512 = vst [vmem:[%s1117_s24 + $0x98] sm:$0xff] %v448_v23  ;;  %v451_v35 = vadd.f32 %v387_v26, %v323_v25  ;;  %v326_v37 = vmul.f32 %v1094_v1, %v261_v33  ;;  %v391_v40 = vld [vmem:[%s1087_s6 + $0xd0] sm:$0xff]  ;;  %v452_v41 = vadd.f32 %v388_v28, %v324_v30  ;;  %v327_v42 = vmul.f32 %v1094_v1, %v262_v39  ;;  %v263_v43 = vld [vmem:[%s1079_s23 + $0xd8] sm:$0xff]  ;;  %v264_v45 = vld [vmem:[%s1079_s23 + $0xe0] sm:$0xff] }
  0x6a   : > { %513 = vst [vmem:[%s1117_s24 + $0xa0] sm:$0xff] %v449_v29  ;;  %v392_v44 = vld [vmem:[%s1087_s6 + $0xd8] sm:$0xff]  ;;  %514 = vst [vmem:[%s1117_s24 + $0xa8] sm:$0xff] %v450_v34  ;;  %v453_v46 = vadd.f32 %v389_v32, %v325_v36  ;;  %v328_v48 = vmul.f32 %v1094_v1, %v263_v43  ;;  %v329_v49 = vmul.f32 %v1094_v1, %v264_v45  ;;  %v393_v50 = vld [vmem:[%s1087_s6 + $0xe0] sm:$0xff] }
  0x6b   : > { %515 = vst [vmem:[%s1117_s24 + $0xb0] sm:$0xff] %v451_v35  ;;  %v454_v47 = vadd.f32 %v390_v38, %v326_v37  ;;  %v265_v51 = vld [vmem:[%s1079_s23 + $0xe8] sm:$0xff]  ;;  %516 = vst [vmem:[%s1117_s24 + $0xb8] sm:$0xff] %v452_v41  ;;  %v455_v53 = vadd.f32 %v391_v40, %v327_v42  ;;  %v266_v55 = vld [vmem:[%s1079_s23 + $0xf0] sm:$0xff] }
  0x6c   : > { %v394_v52 = vld [vmem:[%s1087_s6 + $0xe8] sm:$0xff]  ;;  %v330_v54 = vmul.f32 %v1094_v1, %v265_v51  ;;  %v395_v56 = vld [vmem:[%s1087_s6 + $0xf0] sm:$0xff]  ;;  %v267_v57 = vld [vmem:[%s1079_s23 + $0xf8] sm:$0xff]  ;;  %517 = vst [vmem:[%s1117_s24 + $0xc0] sm:$0xff] %v453_v46  ;;  %v456_v58 = vadd.f32 %v392_v44, %v328_v48  ;;  %v457_v59 = vadd.f32 %v393_v50, %v329_v49  ;;  %v331_v60 = vmul.f32 %v1094_v1, %v266_v55 }
  0x6d   : > { %518 = vst [vmem:[%s1117_s24 + $0xc8] sm:$0xff] %v454_v47  ;;  %v332_v61 = vmul.f32 %v1094_v1, %v267_v57  ;;  %v396_v62 = vld [vmem:[%s1087_s6 + $0xf8] sm:$0xff]  ;;  %v268_v63 = vld [vmem:[%s1079_s23 + $0x100] sm:$0xff]  ;;  %519 = vst [vmem:[%s1117_s24 + $0xd0] sm:$0xff] %v455_v53 }
  0x6e   : > { %v397_v0 = vld [vmem:[%s1087_s6 + $0x100] sm:$0xff]  ;;  %v458_v2 = vadd.f32 %v394_v52, %v330_v54  ;;  %v333_v3 = vmul.f32 %v1094_v1, %v268_v63  ;;  %v269_v4 = vld [vmem:[%s1079_s23 + $0x108] sm:$0xff]  ;;  %v270_v6 = vld [vmem:[%s1079_s23 + $0x110] sm:$0xff]  ;;  %520 = vst [vmem:[%s1117_s24 + $0xd8] sm:$0xff] %v456_v58  ;;  %v459_v7 = vadd.f32 %v395_v56, %v331_v60 }
  0x6f   : > { %v398_v5 = vld [vmem:[%s1087_s6 + $0x108] sm:$0xff]  ;;  %521 = vst [vmem:[%s1117_s24 + $0xe0] sm:$0xff] %v457_v59  ;;  %v460_v8 = vadd.f32 %v396_v62, %v332_v61  ;;  %v334_v9 = vmul.f32 %v1094_v1, %v269_v4  ;;  %v335_v10 = vmul.f32 %v1094_v1, %v270_v6  ;;  %v399_v11 = vld [vmem:[%s1087_s6 + $0x110] sm:$0xff]  ;;  %v271_v12 = vld [vmem:[%s1079_s23 + $0x118] sm:$0xff] }
  0x70   : > { %v400_v13 = vld [vmem:[%s1087_s6 + $0x118] sm:$0xff]  ;;  %522 = vst [vmem:[%s1117_s24 + $0xe8] sm:$0xff] %v458_v2  ;;  %v461_v14 = vadd.f32 %v397_v0, %v333_v3  ;;  %v336_v15 = vmul.f32 %v1094_v1, %v271_v12  ;;  %v272_v16 = vld [vmem:[%s1079_s23 + $0x120] sm:$0xff]  ;;  %v273_v18 = vld [vmem:[%s1079_s23 + $0x128] sm:$0xff] }
  0x71   : > { %v401_v17 = vld [vmem:[%s1087_s6 + $0x120] sm:$0xff]  ;;  %523 = vst [vmem:[%s1117_s24 + $0xf0] sm:$0xff] %v459_v7  ;;  %524 = vst [vmem:[%s1117_s24 + $0xf8] sm:$0xff] %v460_v8  ;;  %v462_v19 = vadd.f32 %v398_v5, %v334_v9  ;;  %v463_v20 = vadd.f32 %v399_v11, %v335_v10  ;;  %v337_v21 = vmul.f32 %v1094_v1, %v272_v16  ;;  %v402_v23 = vld [vmem:[%s1087_s6 + $0x128] sm:$0xff] }
  0x72   : > { %v338_v22 = vmul.f32 %v1094_v1, %v273_v18  ;;  %v274_v24 = vld [vmem:[%s1079_s23 + $0x130] sm:$0xff]  ;;  %525 = vst [vmem:[%s1117_s24 + $0x100] sm:$0xff] %v461_v14  ;;  %v464_v26 = vadd.f32 %v400_v13, %v336_v15  ;;  %v275_v28 = vld [vmem:[%s1079_s23 + $0x138] sm:$0xff]  ;;  %v276_v30 = vld [vmem:[%s1079_s23 + $0x140] sm:$0xff] }
  0x73   : > { %v403_v25 = vld [vmem:[%s1087_s6 + $0x130] sm:$0xff]  ;;  %v339_v27 = vmul.f32 %v1094_v1, %v274_v24  ;;  %v404_v29 = vld [vmem:[%s1087_s6 + $0x138] sm:$0xff]  ;;  %526 = vst [vmem:[%s1117_s24 + $0x108] sm:$0xff] %v462_v19  ;;  %527 = vst [vmem:[%s1117_s24 + $0x110] sm:$0xff] %v463_v20  ;;  %v465_v31 = vadd.f32 %v401_v17, %v337_v21  ;;  %v340_v33 = vmul.f32 %v1094_v1, %v275_v28 }
  0x74   : > { %v466_v32 = vadd.f32 %v402_v23, %v338_v22  ;;  %v341_v34 = vmul.f32 %v1094_v1, %v276_v30  ;;  %v405_v35 = vld [vmem:[%s1087_s6 + $0x140] sm:$0xff]  ;;  %v277_v36 = vld [vmem:[%s1079_s23 + $0x148] sm:$0xff]  ;;  %528 = vst [vmem:[%s1117_s24 + $0x118] sm:$0xff] %v464_v26  ;;  %v278_v40 = vld [vmem:[%s1079_s23 + $0x150] sm:$0xff] }
  0x75   : > { %v406_v37 = vld [vmem:[%s1087_s6 + $0x148] sm:$0xff]  ;;  %v467_v38 = vadd.f32 %v403_v25, %v339_v27  ;;  %v342_v39 = vmul.f32 %v1094_v1, %v277_v36  ;;  %v407_v41 = vld [vmem:[%s1087_s6 + $0x150] sm:$0xff]  ;;  %v279_v42 = vld [vmem:[%s1079_s23 + $0x158] sm:$0xff]  ;;  %529 = vst [vmem:[%s1117_s24 + $0x120] sm:$0xff] %v465_v31  ;;  %v468_v43 = vadd.f32 %v404_v29, %v340_v33  ;;  %v343_v45 = vmul.f32 %v1094_v1, %v278_v40 }
  0x76   : > { %530 = vst [vmem:[%s1117_s24 + $0x128] sm:$0xff] %v466_v32  ;;  %v469_v44 = vadd.f32 %v405_v35, %v341_v34  ;;  %v344_v46 = vmul.f32 %v1094_v1, %v279_v42  ;;  %v408_v47 = vld [vmem:[%s1087_s6 + $0x158] sm:$0xff]  ;;  %v280_v48 = vld [vmem:[%s1079_s23 + $0x160] sm:$0xff]  ;;  %v281_v52 = vld [vmem:[%s1079_s23 + $0x168] sm:$0xff] }
  0x77   : > { %v409_v49 = vld [vmem:[%s1087_s6 + $0x160] sm:$0xff]  ;;  %531 = vst [vmem:[%s1117_s24 + $0x130] sm:$0xff] %v467_v38  ;;  %v470_v50 = vadd.f32 %v406_v37, %v342_v39  ;;  %v345_v51 = vmul.f32 %v1094_v1, %v280_v48  ;;  %v410_v53 = vld [vmem:[%s1087_s6 + $0x168] sm:$0xff]  ;;  %v282_v54 = vld [vmem:[%s1079_s23 + $0x170] sm:$0xff]  ;;  %v471_v55 = vadd.f32 %v407_v41, %v343_v45  ;;  %v346_v57 = vmul.f32 %v1094_v1, %v281_v52 }
  0x78   : > { %532 = vst [vmem:[%s1117_s24 + $0x138] sm:$0xff] %v468_v43  ;;  %533 = vst [vmem:[%s1117_s24 + $0x140] sm:$0xff] %v469_v44  ;;  %v472_v56 = vadd.f32 %v408_v47, %v344_v46  ;;  %v347_v58 = vmul.f32 %v1094_v1, %v282_v54  ;;  %v411_v59 = vld [vmem:[%s1087_s6 + $0x170] sm:$0xff]  ;;  %v283_v60 = vld [vmem:[%s1079_s23 + $0x178] sm:$0xff] }
  0x79   : > { %v412_v61 = vld [vmem:[%s1087_s6 + $0x178] sm:$0xff]  ;;  %534 = vst [vmem:[%s1117_s24 + $0x148] sm:$0xff] %v470_v50  ;;  %v473_v62 = vadd.f32 %v409_v49, %v345_v51  ;;  %v348_v63 = vmul.f32 %v1094_v1, %v283_v60  ;;  %v284_v0 = vld [vmem:[%s1079_s23 + $0x180] sm:$0xff]  ;;  %v285_v3 = vld [vmem:[%s1079_s23 + $0x188] sm:$0xff]  ;;  %v474_v4 = vadd.f32 %v410_v53, %v346_v57 }
  0x7a   : > { %v413_v2 = vld [vmem:[%s1087_s6 + $0x180] sm:$0xff]  ;;  %535 = vst [vmem:[%s1117_s24 + $0x150] sm:$0xff] %v471_v55  ;;  %536 = vst [vmem:[%s1117_s24 + $0x158] sm:$0xff] %v472_v56  ;;  %v475_v5 = vadd.f32 %v411_v59, %v347_v58  ;;  %v349_v6 = vmul.f32 %v1094_v1, %v284_v0  ;;  %v350_v7 = vmul.f32 %v1094_v1, %v285_v3  ;;  %v414_v8 = vld [vmem:[%s1087_s6 + $0x188] sm:$0xff] }
  0x7b   : > { %v286_v9 = vld [vmem:[%s1079_s23 + $0x190] sm:$0xff]  ;;  %537 = vst [vmem:[%s1117_s24 + $0x160] sm:$0xff] %v473_v62  ;;  %v476_v11 = vadd.f32 %v412_v61, %v348_v63  ;;  %v287_v13 = vld [vmem:[%s1079_s23 + $0x198] sm:$0xff]  ;;  %v288_v15 = vld [vmem:[%s1079_s23 + $0x1a0] sm:$0xff] }
  0x7c   : > { %v415_v10 = vld [vmem:[%s1087_s6 + $0x190] sm:$0xff]  ;;  %v351_v12 = vmul.f32 %v1094_v1, %v286_v9  ;;  %v416_v14 = vld [vmem:[%s1087_s6 + $0x198] sm:$0xff]  ;;  %538 = vst [vmem:[%s1117_s24 + $0x168] sm:$0xff] %v474_v4  ;;  %539 = vst [vmem:[%s1117_s24 + $0x170] sm:$0xff] %v475_v5  ;;  %v477_v16 = vadd.f32 %v413_v2, %v349_v6  ;;  %v478_v17 = vadd.f32 %v414_v8, %v350_v7 }
  0x7d   : > { %v352_v18 = vmul.f32 %v1094_v1, %v287_v13  ;;  %v353_v19 = vmul.f32 %v1094_v1, %v288_v15  ;;  %v417_v20 = vld [vmem:[%s1087_s6 + $0x1a0] sm:$0xff]  ;;  %v289_v21 = vld [vmem:[%s1079_s23 + $0x1a8] sm:$0xff]  ;;  %540 = vst [vmem:[%s1117_s24 + $0x178] sm:$0xff] %v476_v11  ;;  %v290_v25 = vld [vmem:[%s1079_s23 + $0x1b0] sm:$0xff] }
  0x7e   : > { %v418_v22 = vld [vmem:[%s1087_s6 + $0x1a8] sm:$0xff]  ;;  %v479_v23 = vadd.f32 %v415_v10, %v351_v12  ;;  %v354_v24 = vmul.f32 %v1094_v1, %v289_v21  ;;  %v419_v26 = vld [vmem:[%s1087_s6 + $0x1b0] sm:$0xff]  ;;  %v291_v27 = vld [vmem:[%s1079_s23 + $0x1b8] sm:$0xff]  ;;  %541 = vst [vmem:[%s1117_s24 + $0x180] sm:$0xff] %v477_v16  ;;  %v355_v30 = vmul.f32 %v1094_v1, %v290_v25 }
  0x7f   : > { %542 = vst [vmem:[%s1117_s24 + $0x188] sm:$0xff] %v478_v17  ;;  %v480_v28 = vadd.f32 %v416_v14, %v352_v18  ;;  %v481_v29 = vadd.f32 %v417_v20, %v353_v19  ;;  %v356_v31 = vmul.f32 %v1094_v1, %v291_v27  ;;  %v420_v32 = vld [vmem:[%s1087_s6 + $0x1b8] sm:$0xff]  ;;  %v292_v33 = vld [vmem:[%s1079_s23 + $0x1c0] sm:$0xff]  ;;  %v293_v37 = vld [vmem:[%s1079_s23 + $0x1c8] sm:$0xff] }
  0x80   : > { %v421_v34 = vld [vmem:[%s1087_s6 + $0x1c0] sm:$0xff]  ;;  %543 = vst [vmem:[%s1117_s24 + $0x190] sm:$0xff] %v479_v23  ;;  %v482_v35 = vadd.f32 %v418_v22, %v354_v24  ;;  %v357_v36 = vmul.f32 %v1094_v1, %v292_v33  ;;  %v422_v38 = vld [vmem:[%s1087_s6 + $0x1c8] sm:$0xff]  ;;  %v294_v39 = vld [vmem:[%s1079_s23 + $0x1d0] sm:$0xff]  ;;  %v483_v40 = vadd.f32 %v419_v26, %v355_v30  ;;  %v358_v42 = vmul.f32 %v1094_v1, %v293_v37 }
  0x81   : > { %544 = vst [vmem:[%s1117_s24 + $0x198] sm:$0xff] %v480_v28  ;;  %545 = vst [vmem:[%s1117_s24 + $0x1a0] sm:$0xff] %v481_v29  ;;  %v484_v41 = vadd.f32 %v420_v32, %v356_v31  ;;  %v359_v43 = vmul.f32 %v1094_v1, %v294_v39  ;;  %v423_v44 = vld [vmem:[%s1087_s6 + $0x1d0] sm:$0xff]  ;;  %v295_v45 = vld [vmem:[%s1079_s23 + $0x1d8] sm:$0xff] }
  0x82   : > { %v424_v46 = vld [vmem:[%s1087_s6 + $0x1d8] sm:$0xff]  ;;  %546 = vst [vmem:[%s1117_s24 + $0x1a8] sm:$0xff] %v482_v35  ;;  %v485_v47 = vadd.f32 %v421_v34, %v357_v36  ;;  %v360_v48 = vmul.f32 %v1094_v1, %v295_v45  ;;  %v296_v49 = vld [vmem:[%s1079_s23 + $0x1e0] sm:$0xff]  ;;  %v297_v51 = vld [vmem:[%s1079_s23 + $0x1e8] sm:$0xff]  ;;  %v486_v52 = vadd.f32 %v422_v38, %v358_v42 }
  0x83   : > { %v425_v50 = vld [vmem:[%s1087_s6 + $0x1e0] sm:$0xff]  ;;  %547 = vst [vmem:[%s1117_s24 + $0x1b0] sm:$0xff] %v483_v40  ;;  %548 = vst [vmem:[%s1117_s24 + $0x1b8] sm:$0xff] %v484_v41  ;;  %v487_v53 = vadd.f32 %v423_v44, %v359_v43  ;;  %v361_v54 = vmul.f32 %v1094_v1, %v296_v49  ;;  %v362_v55 = vmul.f32 %v1094_v1, %v297_v51  ;;  %v426_v56 = vld [vmem:[%s1087_s6 + $0x1e8] sm:$0xff] }
  0x84   : > { %v298_v57 = vld [vmem:[%s1079_s23 + $0x1f0] sm:$0xff]  ;;  %549 = vst [vmem:[%s1117_s24 + $0x1c0] sm:$0xff] %v485_v47  ;;  %v488_v59 = vadd.f32 %v424_v46, %v360_v48  ;;  %v299_v61 = vld [vmem:[%s1079_s23 + $0x1f8] sm:$0xff]  ;;  %550 = vst [vmem:[%s1117_s24 + $0x1c8] sm:$0xff] %v486_v52 }
  0x85   : > { %v427_v58 = vld [vmem:[%s1087_s6 + $0x1f0] sm:$0xff]  ;;  %v363_v60 = vmul.f32 %v1094_v1, %v298_v57  ;;  %v428_v62 = vld [vmem:[%s1087_s6 + $0x1f8] sm:$0xff]  ;;  %551 = vst [vmem:[%s1117_s24 + $0x1d0] sm:$0xff] %v487_v53  ;;  %v489_v63 = vadd.f32 %v425_v50, %v361_v54  ;;  %v490_v0 = vadd.f32 %v426_v56, %v362_v55  ;;  %v364_v2 = vmul.f32 %v1094_v1, %v299_v61 }
  0x86   : > { %552 = vst [vmem:[%s1117_s24 + $0x1d8] sm:$0xff] %v488_v59 }
  0x87   : > { %v491_v3 = vadd.f32 %v427_v58, %v363_v60  ;;  %553 = vst [vmem:[%s1117_s24 + $0x1e0] sm:$0xff] %v489_v63  ;;  %554 = vst [vmem:[%s1117_s24 + $0x1e8] sm:$0xff] %v490_v0  ;;  %v492_v4 = vadd.f32 %v428_v62, %v364_v2 }
  0x89   : > { %555 = vst [vmem:[%s1117_s24 + $0x1f0] sm:$0xff] %v491_v3  ;;  %556 = vst [vmem:[%s1117_s24 + $0x1f8] sm:$0xff] %v492_v4 }
  0x8a   : > { %823 = shalt.err (!%p820_p11)
}
  0x8b   : > { %s824_s13 = scalar_lea.hbm %s1355_s5, 8192  ;;  %s828_s8 = scalar_lea.hbm %s1408_s3, 16384 }
  0x8c   : > { %p825_p3 = scmp.ne.s32.totalorder %s1355_s5, %s824_s13  ;;  %p829_p2 = scmp.lt.u32.totalorder %s1355_s5, %s1408_s3 }
  0x8d   : > { %p830_p4 = scmp.lt.u32.totalorder %s828_s8, %s824_s13  ;;  %p832_p13 = scmp.lt.u32.totalorder %s824_s13, %s1355_s5 }
  0x8e   : > { %p826_p8 = pnand %p825_p3, %p1418_p1 }
  0x8f   : > { %p831_p6 = por %p830_p4, %p829_p2 }
  0x90   : > { %p827_p0 = pneg %p826_p8 }
  0x91   : > { %p833_p12 = por %p832_p13, %p831_p6 }
  0x93   : > { %p834_p10 = pnand %p833_p12, %p827_p0 }
  0x95   : > { %837 = shalt.err (!%p834_p10)
}
  0x96   : > { %s887_s6 = smov 1024   ;;  %s888_s10 = smov 64  }
  0x97   : > { %699 = dma.vmem_to_hbm [thread:$0]  (%p1418_p1), %s1357_s18, 8192, %s1355_s5, %s558_s28, %s887_s6, %s887_s6, %s888_s10  }
  0x98 PF: > { %s587_s24 = sand.u32 1, %s868_s14   ;;  %p1419_p5 = scmp.ne.s32.totalorder %s1414_s26, 0 }
  0x99   : > { %p1420_p7 = scmp.ge.s32.totalorder %s880_s17, 2  ;;  %s588_s11 = scalar_lea.sflag [#allocation5], %s587_s24 }
  0x9b   : > { %p709_p9 = pnand %p1420_p7, %p1419_p5 }
  0x9d   : > { %863 = dma.done.wait (!%p709_p9), %s588_s11, 8192  }
  0x9e   : > { %865 = vsyncadd (!%p709_p9), %s588_s11, 4294959104  ;;  %p20_p11 = scmp.ge.s32.totalorder %s937_s19, 4   ;;  %s1421_s14 = smov %s872_s15 }
  0x9f   : > { %s1422_s15 = smov %s876_s16  ;;  %s1423_s16 = smov %s949_s22 }
  0xa0   : > { %s1424_s17 = smov %s937_s19  ;;  %22 = sbr.rel (!%p20_p11) target bundleno = 9 (0x9), region = 90 }
  0xa7   :  { %593 = vsyncpa [#allocation4], 1 }
  0xa8   :  { %595 = vsyncpa [#allocation4 + $0x1], 1 }
  0xa9   :  { %596 = vsyncpa [#allocation7], 1 }
  0xaa   :  { %598 = vsyncpa [#allocation7 + $0x1], 1 }
  0xab   :  { %599 = vsyncpa [#allocation5], 1 }
  0xac   :  { %601 = vsyncpa [#allocation5 + $0x1], 1 }

</bundles_post_ra>
